<compile_context>
chip_gen: v7x
topology: tpu7x:2x2x1
jax: 0.10.0
libtpu: 0.0.40
codegen_flags: <defaults>
</compile_context>

<pallas_src>
import jax
import jax.numpy as jnp
from jax.experimental import pallas as pl
from jax.experimental.pallas import tpu as pltpu

_HI = jax.lax.Precision.HIGHEST


# ----------------------------- Pallas kernel --------------------------------

def _timeblock_kernel(x_ref, w_ref, b_ref, o_ref):
    """One row tile of the fused TimeBlock.

    x_ref: (tile_m*T, Cin)   tile_m whole time series, rows flattened (m, t)
    w_ref: (K, Cin, 2*Cout)  [:, :, :Cout] = w1+w3, [:, :, Cout:] = w2
    b_ref: (1, 2*Cout)
    o_ref: (tile_m*T, Cout)  rows with t >= T_out are junk (wrapper slices
                             them off); only the first rt-(K-1) rows written.
    """
    rt = x_ref.shape[0]
    k = w_ref.shape[0]
    co2 = w_ref.shape[2]
    cout = co2 // 2
    L = rt - (k - 1)

    x = x_ref[...]
    acc = None
    for dk in range(k):                          # static unroll (K == 3)
        xs = x[dk:dk + L, :]                     # static sublane shift (VMEM)
        z = jnp.dot(xs, w_ref[dk], preferred_element_type=jnp.float32)
        acc = z if acc is None else acc + z
    y = acc + b_ref[...]                         # (L, 2*Cout) f32
    out = jnp.maximum(y[:, :cout] + jax.nn.sigmoid(y[:, cout:]), 0.0)
    o_ref[:L, :] = out.astype(o_ref.dtype)


def _pick_tile_m(M, T, target_rows, min_steps):
    """Number of whole time-series per block; block sublane extent 8-aligned."""
    tile_m = max(1, min(M, target_rows // max(T, 1)))
    if min_steps > 1 and M > 1:
        # Keep >= min_steps grid steps so v7x megacore has work for both TCs.
        tile_m = min(tile_m, pl.cdiv(M, min_steps))
    while tile_m < M and (tile_m * T) % 8 != 0:
        tile_m += 1                              # block == full array is legal
    return tile_m


def timeblock_pallas(x, w1, b1, w2, b2, w3, b3, *, target_rows=2048,
                     min_grid_steps=2, stream_dtype=None):
    """Fused TimeBlock: relu(conv1(x) + sigmoid(conv2(x)) + conv3(x)).

    x:   (B, N, T, Cin) float32
    w_i: (K, Cin, Cout)   (w[dk, ci, co] == torch_weight[co, ci, 0, dk])
    b_i: (Cout,)
    returns (B, N, T-K+1, Cout)
    """
    B, N, T, Cin = x.shape
    K, _, Cout = w1.shape
    T_out = T - K + 1
    M = B * N

    # Small-problem bypass: a K*Cin < 32 contraction (block1.temporal1 here)
    # cannot amortize pallas_call fixed cost or feed the MXU.
    if K * Cin < 32 or M * T_out < 8:
        return _timeblock_ref(x, w1, b1, w2, b2, w3, b3)

    # Algebraic fusion: conv1(x) + conv3(x) == x (*) (w1 + w3) + (b1 + b3).
    w_cat = jnp.concatenate([w1 + w3, w2], axis=2)            # (K, Cin, 2*Cout)
    b_cat = jnp.concatenate([b1 + b3, b2]).reshape(1, 2 * Cout)
    b_cat = b_cat.astype(jnp.float32)

    x_flat = x.reshape(M * T, Cin)                # free leading-dim collapse
    if stream_dtype is not None:                  # bf16 streaming knob (v6e/v7x)
        x_flat = x_flat.astype(stream_dtype)
        w_cat = w_cat.astype(stream_dtype)

    tile_m = _pick_tile_m(M, T, target_rows, min_grid_steps)
    grid = pl.cdiv(M, tile_m)                     # no explicit pad; boundary
    rt = tile_m * T                               # block is masked by Pallas
    co2 = 2 * Cout

    itemsize = jnp.dtype(x_flat.dtype).itemsize
    cost = pl.CostEstimate(
        flops=2 * M * T * K * Cin * co2,
        transcendentals=M * T_out * Cout,
        bytes_accessed=int(M * T * Cin * itemsize
                           + K * Cin * co2 * itemsize
                           + M * T * Cout * 4),
    )

    out_flat = pl.pallas_call(
        _timeblock_kernel,
        out_shape=jax.ShapeDtypeStruct((M * T, Cout), x.dtype),
        grid_spec=pltpu.PrefetchScalarGridSpec(
            num_scalar_prefetch=0,
            grid=(grid,),
            in_specs=[
                pl.BlockSpec((rt, Cin), lambda i: (i, 0)),
                pl.BlockSpec((K, Cin, co2), lambda i: (0, 0, 0)),   # resident
                pl.BlockSpec((1, co2), lambda i: (0, 0)),           # resident
            ],
            out_specs=pl.BlockSpec((rt, Cout), lambda i: (i, 0)),
        ),
        compiler_params=pltpu.CompilerParams(
            dimension_semantics=("parallel",)),
        cost_estimate=cost,
    )(x_flat, w_cat, b_cat)

    # Rows with t >= T_out are junk (tap window would cross series); drop them.
    return out_flat.reshape(B, N, T, Cout)[:, :, :T_out, :]


# ----------------------- plain-JAX reference TimeBlock -----------------------

def _timeblock_ref(x, w1, b1, w2, b2, w3, b3):
    K = w1.shape[0]
    T_out = x.shape[2] - K + 1

    def conv(w, b):
        acc = 0.0
        for dk in range(K):
            acc = acc + jnp.einsum("bntc,cd->bntd", x[:, :, dk:dk + T_out, :],
                                   w[dk], precision=_HI)
        return acc + b

    return jax.nn.relu(conv(w1, b1) + jax.nn.sigmoid(conv(w2, b2)) +
                       conv(w3, b3))


# ----------------------- STGCN glue (plain JAX wrapper) ----------------------

def _graph_conv(t, A_hat, theta):
    # torch: lfs = einsum('ij,jklm->kilm', A_hat, t.permute(1,0,2,3))
    #            = einsum('ij,bjtc->bitc', A_hat, t);  t2 = relu(lfs @ theta)
    lfs = jnp.einsum("ij,bjtc->bitc", A_hat, t, precision=_HI)
    return jax.nn.relu(jnp.matmul(lfs, theta, precision=_HI))


def _batch_norm_nodes(x, eps=1e-5):
    # nn.BatchNorm2d(num_nodes) in default (training-mode) forward with
    # default affine init (gamma=1, beta=0): normalize each node over (B,T,C).
    mean = jnp.mean(x, axis=(0, 2, 3), keepdims=True)
    var = jnp.mean((x - mean) ** 2, axis=(0, 2, 3), keepdims=True)
    return (x - mean) / jnp.sqrt(var + eps)


def _stgcn_block(x, A_hat, params, timeblock_fn):
    t = timeblock_fn(x, *params["temporal1"])
    t2 = _graph_conv(t, A_hat, params["theta1"])
    t3 = timeblock_fn(t2, *params["temporal2"])
    return _batch_norm_nodes(t3)


def stgcn_forward(A_hat, X, params, timeblock_fn):
    out1 = _stgcn_block(X, A_hat, params["block1"], timeblock_fn)
    out2 = _stgcn_block(out1, A_hat, params["block2"], timeblock_fn)
    out3 = timeblock_fn(out2, *params["last_temporal"])
    B, N = out3.shape[0], out3.shape[1]
    flat = out3.reshape(B, N, -1)
    return jnp.matmul(flat, params["fc_w"].T, precision=_HI) + params["fc_b"]


# ----------------------- parameter init (deterministic) ----------------------

def _init_timeblock(key, cin, cout, K=3):
    k1, k2, k3, kb1, kb2, kb3 = jax.random.split(key, 6)
    scale = 1.0 / (cin * K) ** 0.5
    u = lambda k, shp: jax.random.uniform(k, shp, jnp.float32, -scale, scale)
    return (u(k1, (K, cin, cout)), u(kb1, (cout,)),
            u(k2, (K, cin, cout)), u(kb2, (cout,)),
            u(k3, (K, cin, cout)), u(kb3, (cout,)))


def _init_block(key, cin, spatial, cout):
    k1, k2, k3 = jax.random.split(key, 3)
    stdv = 1.0 / spatial ** 0.5
    return {
        "temporal1": _init_timeblock(k1, cin, cout),
        "theta1": jax.random.uniform(k3, (cout, spatial), jnp.float32,
                                     -stdv, stdv),
        "temporal2": _init_timeblock(k2, spatial, cout),
    }


if __name__ == "__main__":
    # Small STGCN: batch=2, nodes=4, features=4, 16 input steps, 3 output steps.
    B, num_nodes, num_features, T_in, T_pred = 2, 4, 4, 16, 3

    key = jax.random.PRNGKey(0)
    kx, ka, kb1, kb2, kl, kfw, kfb, kt, ktx = jax.random.split(key, 9)

    X = jax.random.normal(kx, (B, num_nodes, T_in, num_features), jnp.float32)
    A = jax.random.uniform(ka, (num_nodes, num_nodes), jnp.float32)
    A_hat = A / jnp.sum(A, axis=1, keepdims=True)      # row-normalized adjacency

    fc_in = (T_in - 2 * 5) * 64
    fs = 1.0 / fc_in ** 0.5
    params = {
        "block1": _init_block(kb1, num_features, 16, 64),
        "block2": _init_block(kb2, 64, 16, 64),
        "last_temporal": _init_timeblock(kl, 64, 64),
        "fc_w": jax.random.uniform(kfw, (T_pred, fc_in), jnp.float32, -fs, fs),
        "fc_b": jax.random.uniform(kfb, (T_pred,), jnp.float32, -fs, fs),
    }

    # Sanity check: Pallas TimeBlock vs reference on a 64-channel input
    # (this hits the Pallas path; the 4-channel block1.temporal1 uses the
    # small-problem bypass by design).
    tb_params = _init_timeblock(kt, 64, 64)
    x64 = jax.random.normal(ktx, (B, num_nodes, T_in, 64), jnp.float32)
    tb_out = jax.block_until_ready(timeblock_pallas(x64, *tb_params))
    tb_ref = _timeblock_ref(x64, *tb_params)
    assert tb_out.shape == (B, num_nodes, T_in - 2, 64)
    assert jnp.allclose(tb_out, tb_ref, atol=1e-4, rtol=1e-4), (
        float(jnp.max(jnp.abs(tb_out - tb_ref))))

    # Full STGCN forward with the Pallas TimeBlock vs plain-JAX reference.
    out = stgcn_forward(A_hat, X, params, timeblock_pallas)
    out = jax.block_until_ready(out)
    ref = stgcn_forward(A_hat, X, params, _timeblock_ref)

    assert out.shape == (B, num_nodes, T_pred)
    assert jnp.allclose(out, ref, atol=1e-3, rtol=1e-3), (
        float(jnp.max(jnp.abs(out - ref))))

    print("KERNEL_OK")
</pallas_src>

<mosaic_0001>
module attributes {stable_mosaic.version = 11 : i64} {
  func.func @_timeblock_kernel(%arg0: i32, %arg1: memref<64x64xf32, #tpu.memory_space<vmem>>, %arg2: memref<3x64x128xf32, #tpu.memory_space<vmem>>, %arg3: memref<1x128xf32, #tpu.memory_space<vmem>>, %arg4: memref<64x64xf32, #tpu.memory_space<vmem>>) attributes {dimension_semantics = [#tpu.dimension_semantics<parallel>], iteration_bounds = array<i64: 2>, scalar_prefetch = 0 : i64, scratch_operands = 0 : i64, tpu.core_type = #tpu.core_type<tc>, window_params = [{transform_indices = @transform_0, window_bounds = array<i64: 64, 64>}, {pipeline_mode = #tpu.pipeline_mode<synchronous>, transform_indices = @transform_1, window_bounds = array<i64: 3, 64, 128>}, {pipeline_mode = #tpu.pipeline_mode<synchronous>, transform_indices = @transform_2, window_bounds = array<i64: 1, 128>}, {transform_indices = @transform_3, window_bounds = array<i64: 64, 64>}]} {
    %c0 = arith.constant 0 : index
    %c0_0 = arith.constant 0 : index
    %0 = vector.load %arg1[%c0, %c0_0] : memref<64x64xf32, #tpu.memory_space<vmem>>, vector<64x64xf32>
    %1 = vector.extract_strided_slice %0 {offsets = [0, 0], sizes = [62, 64], strides = [1, 1]} : vector<64x64xf32> to vector<62x64xf32>
    %c0_1 = arith.constant 0 : index
    %c0_2 = arith.constant 0 : index
    %c0_3 = arith.constant 0 : index
    %2 = vector.load %arg2[%c0_1, %c0_2, %c0_3] : memref<3x64x128xf32, #tpu.memory_space<vmem>>, vector<1x64x128xf32>
    %3 = vector.shape_cast %2 : vector<1x64x128xf32> to vector<64x128xf32>
    %cst = arith.constant dense<0.000000e+00> : vector<62x128xf32>
    %4 = tpu.matmul %1, %3, %cst {dimension_numbers = #tpu.dot_dimension_numbers<[1], [0], [0], [1], [0, 0, 1, 1], [], []>} : vector<62x64xf32>, vector<64x128xf32>, vector<62x128xf32> -> vector<62x128xf32>
    %5 = vector.extract_strided_slice %0 {offsets = [1, 0], sizes = [62, 64], strides = [1, 1]} : vector<64x64xf32> to vector<62x64xf32>
    %c1 = arith.constant 1 : index
    %c0_4 = arith.constant 0 : index
    %c0_5 = arith.constant 0 : index
    %6 = vector.load %arg2[%c1, %c0_4, %c0_5] : memref<3x64x128xf32, #tpu.memory_space<vmem>>, vector<1x64x128xf32>
    %7 = vector.shape_cast %6 : vector<1x64x128xf32> to vector<64x128xf32>
    %cst_6 = arith.constant dense<0.000000e+00> : vector<62x128xf32>
    %8 = tpu.matmul %5, %7, %cst_6 {dimension_numbers = #tpu.dot_dimension_numbers<[1], [0], [0], [1], [0, 0, 1, 1], [], []>} : vector<62x64xf32>, vector<64x128xf32>, vector<62x128xf32> -> vector<62x128xf32>
    %9 = arith.addf %4, %8 : vector<62x128xf32>
    %10 = vector.extract_strided_slice %0 {offsets = [2, 0], sizes = [62, 64], strides = [1, 1]} : vector<64x64xf32> to vector<62x64xf32>
    %c2 = arith.constant 2 : index
    %c0_7 = arith.constant 0 : index
    %c0_8 = arith.constant 0 : index
    %11 = vector.load %arg2[%c2, %c0_7, %c0_8] : memref<3x64x128xf32, #tpu.memory_space<vmem>>, vector<1x64x128xf32>
    %12 = vector.shape_cast %11 : vector<1x64x128xf32> to vector<64x128xf32>
    %cst_9 = arith.constant dense<0.000000e+00> : vector<62x128xf32>
    %13 = tpu.matmul %10, %12, %cst_9 {dimension_numbers = #tpu.dot_dimension_numbers<[1], [0], [0], [1], [0, 0, 1, 1], [], []>} : vector<62x64xf32>, vector<64x128xf32>, vector<62x128xf32> -> vector<62x128xf32>
    %14 = arith.addf %9, %13 : vector<62x128xf32>
    %c0_10 = arith.constant 0 : index
    %c0_11 = arith.constant 0 : index
    %15 = vector.load %arg3[%c0_10, %c0_11] : memref<1x128xf32, #tpu.memory_space<vmem>>, vector<1x128xf32>
    %16 = vector.broadcast %15 : vector<1x128xf32> to vector<62x128xf32>
    %17 = arith.addf %14, %16 : vector<62x128xf32>
    %18 = vector.extract_strided_slice %17 {offsets = [0, 0], sizes = [62, 64], strides = [1, 1]} : vector<62x128xf32> to vector<62x64xf32>
    %19 = vector.extract_strided_slice %17 {offsets = [0, 64], sizes = [62, 64], strides = [1, 1]} : vector<62x128xf32> to vector<62x64xf32>
    %20 = arith.negf %19 : vector<62x64xf32>
    %21 = math.exp %20 : vector<62x64xf32>
    %cst_12 = arith.constant 1.000000e+00 : f32
    %22 = vector.broadcast %cst_12 : f32 to vector<62x64xf32>
    %23 = arith.addf %22, %21 : vector<62x64xf32>
    %24 = arith.divf %22, %23 : vector<62x64xf32>
    %25 = arith.addf %18, %24 : vector<62x64xf32>
    %cst_13 = arith.constant 0.000000e+00 : f32
    %26 = vector.broadcast %cst_13 : f32 to vector<62x64xf32>
    %27 = arith.maximumf %25, %26 : vector<62x64xf32>
    %c0_14 = arith.constant 0 : index
    %c0_15 = arith.constant 0 : index
    %28 = vector.load %arg4[%c0_14, %c0_15] : memref<64x64xf32, #tpu.memory_space<vmem>>, vector<62x64xf32>
    tpu.vector_store %arg4[%c0_14, %c0_15], %27 {strides = array<i32>} : memref<64x64xf32, #tpu.memory_space<vmem>>, vector<62x64xf32>,
    return
  }
  func.func @transform_0(%arg0: i32) -> (i32, i32) {
    %c0_i32 = arith.constant 0 : i32
    %c0_i32_0 = arith.constant 0 : i32
    return %arg0, %c0_i32 : i32, i32
  }
  func.func @transform_1(%arg0: i32) -> (i32, i32, i32) {
    %c0_i32 = arith.constant 0 : i32
    %c0_i32_0 = arith.constant 0 : i32
    %c0_i32_1 = arith.constant 0 : i32
    %c0_i32_2 = arith.constant 0 : i32
    return %c0_i32, %c0_i32_0, %c0_i32_1 : i32, i32, i32
  }
  func.func @transform_2(%arg0: i32) -> (i32, i32) {
    %c0_i32 = arith.constant 0 : i32
    %c0_i32_0 = arith.constant 0 : i32
    %c0_i32_1 = arith.constant 0 : i32
    return %c0_i32, %c0_i32_0 : i32, i32
  }
  func.func @transform_3(%arg0: i32) -> (i32, i32) {
    %c0_i32 = arith.constant 0 : i32
    %c0_i32_0 = arith.constant 0 : i32
    return %arg0, %c0_i32 : i32, i32
  }
}

</mosaic_0001>

<bundles_post_ra>
// kernel: tpu_custom_call.1
= control target key start
LH: loop header
LB: loop body
LE: loop exit
PB: predicated region body
PF: predicated region fallthrough
CT: control target
= control target key end

     0   :  { %s1130_s12 = smov 0   ;;  %s1346_s0 = inlined_call_operand.vmem [shape: f32[128,64], index: 0, kind: input, shape index: {}]   ;;  %s1347_s1 = inlined_call_operand.vmem [shape: f32[3,64,128], index: 1, kind: input, shape index: {}]   ;;  %s1348_s2 = inlined_call_operand.vmem [shape: f32[1,128], index: 2, kind: input, shape index: {}]   ;;  %s1349_s3 = inlined_call_operand.vmem [shape: f32[128,64], index: 3, kind: output, shape index: {}]  }
   0x1 LB: > { %s796_s13 = sadd.s32 4294967295, %s1107_s12   ;;  %p800_p0 = scmp.ge.s32.totalorder %s1107_s12, 1  ;;  %s1107_s12 = sphi %s1130_s12, %s13_s12  }
   0x2   : > { %p138_p1 = scmp.lt.s32.totalorder %s1107_s12, 3 }
   0x4   : > { %p139_p2 = pnand %p800_p0, %p138_p1 }
   0x5   : > { %v805_v0 = vld [vmem:[%s1347_s1 + $0x40] sm:$0xff] (!%p139_p2)  ;;  %v806_v1 = vld [vmem:[%s1347_s1 + $0x48] sm:$0xff] (!%p139_p2)  ;;  %s801_s20 = sshll.u32 (!%p139_p2), %s796_s13, 3  ;;  %v807_v5 = vld [vmem:[%s1347_s1 + $0x50] sm:$0xff] (!%p139_p2)  ;;  %vm223_vm0 = vcmask (!%p139_p2), 523264   ;;  %vm207_vm1 = vcmask (!%p139_p2), 1046528  }
   0x6   : > { %142 = sbr.rel (%p139_p2) target bundleno = 416 (0x1a0), region = 32  ;;  %v182_v2 = vld [vmem:[%s1347_s1] sm:$0xff] (!%p139_p2)  ;;  %v988_v3 = vpack.c.bf16 (!%p139_p2), %v806_v1, %v805_v0  ;;  %v183_v4 = vld [vmem:[%s1347_s1 + $0x8] sm:$0xff] (!%p139_p2)  ;;  %v808_v6 = vld [vmem:[%s1347_s1 + $0x58] sm:$0xff] (!%p139_p2)  ;;  %p163_p3 = scmp.lt.s32.totalorder (!%p139_p2), %s801_s20, 15  ;;  %vm475_vm2 = vcmask (!%p139_p2), 1045504  }
   0x7   : > { %v1004_v7 = vpack.c.bf16 (!%p139_p2), %v183_v4, %v182_v2  ;;  %v992_v8 = vpack.c.bf16 (!%p139_p2), %v808_v6, %v807_v5  ;;  %v184_v9 = vld [vmem:[%s1347_s1 + $0x10] sm:$0xff] (!%p139_p2)  ;;  %v185_v10 = vld [vmem:[%s1347_s1 + $0x18] sm:$0xff] (!%p139_p2)  ;;  %v809_v11 = vld [vmem:[%s1347_s1 + $0x60] sm:$0xff] (!%p139_p2)  ;;  %s1109_s19 = smov (!%p139_p2), 64   ;;  %vm738_vm3 = vcmask (!%p139_p2), 521216  }
   0x8   : > { %989 = vmatprep.subr.bf16.mxu1 (!%p139_p2), %v988_v3  ;;  %v1008_v12 = vpack.c.bf16 (!%p139_p2), %v185_v10, %v184_v9  ;;  %v810_v13 = vld [vmem:[%s1347_s1 + $0x68] sm:$0xff] (!%p139_p2)  ;;  %v186_v14 = vld [vmem:[%s1347_s1 + $0x20] sm:$0xff] (!%p139_p2)  ;;  %v811_v18 = vld [vmem:[%s1347_s1 + $0x70] sm:$0xff] (!%p139_p2) }
   0x9   : > { %v187_v15 = vld [vmem:[%s1347_s1 + $0x28] sm:$0xff] (!%p139_p2)  ;;  %1005 = vmatprep.subr.bf16.mxu0 (!%p139_p2), %v1004_v7  ;;  %991 = vmatpush3.bf16.msra.mxu1 (!%p139_p2), %v988_v3  ;;  %v996_v16 = vpack.c.bf16 (!%p139_p2), %v810_v13, %v809_v11  ;;  %v812_v19 = vld [vmem:[%s1347_s1 + $0x78] sm:$0xff] (!%p139_p2)  ;;  %v188_v20 = vld [vmem:[%s1347_s1 + $0x30] sm:$0xff] (!%p139_p2) }
   0xa   : > { %1007 = vmatpush3.bf16.msra.mxu0 (!%p139_p2), %v1004_v7  ;;  %993 = vmatprep.subr.bf16.mxu1 (!%p139_p2), %v992_v8  ;;  %v1012_v17 = vpack.c.bf16 (!%p139_p2), %v187_v15, %v186_v14  ;;  %v189_v21 = vld [vmem:[%s1347_s1 + $0x38] sm:$0xff] (!%p139_p2)  ;;  %v1000_v26 = vpack.c.bf16 (!%p139_p2), %v812_v19, %v811_v18  ;;  %v829_v30 = vld [vmem:[%s1347_s1 + $0x80] sm:$0xff] (!%p139_p2)  ;;  %v830_v31 = vld [vmem:[%s1347_s1 + $0x88] sm:$0xff] (!%p139_p2) }
   0xb   : > { %1009 = vmatprep.subr.bf16.mxu0 (!%p139_p2), %v1008_v12  ;;  %v1016_v28 = vpack.c.bf16 (!%p139_p2), %v189_v21, %v188_v20  ;;  %v1020_v34 = vpack.c.bf16 (!%p139_p2), %v830_v31, %v829_v30  ;;  %v831_v37 = vld [vmem:[%s1347_s1 + $0x90] sm:$0xff] (!%p139_p2)  ;;  %v832_v38 = vld [vmem:[%s1347_s1 + $0x98] sm:$0xff] (!%p139_p2)  ;;  %v833_v46 = vld [vmem:[%s1347_s1 + $0xa0] sm:$0xff] (!%p139_p2) }
   0xc   : > { %v1024_v44 = vpack.c.bf16 (!%p139_p2), %v832_v38, %v831_v37  ;;  %v834_v47 = vld [vmem:[%s1347_s1 + $0xa8] sm:$0xff] (!%p139_p2)  ;;  %v835_v54 = vld [vmem:[%s1347_s1 + $0xb0] sm:$0xff] (!%p139_p2)  ;;  %v836_v55 = vld [vmem:[%s1347_s1 + $0xb8] sm:$0xff] (!%p139_p2) }
   0xd   : > { %s1351_s20 = smov (!%p163_p3, %s801_s20), 15  ;;  %995 = vmatpush3.bf16.msra.mxu1 %v992_v8  ;;  %v1028_v52 = vpack.c.bf16 %v834_v47, %v833_v46  ;;  %v1032_v58 = vpack.c.bf16 %v836_v55, %v835_v54 }
   0xe   : > { %s802_s13 = sshll.u32 %s1351_s20, 3  ;;  %1011 = vmatpush3.bf16.msra.mxu0 %v1008_v12  ;;  %997 = vmatprep.subr.bf16.mxu1 %v996_v16 }
   0xf   : > { %s1191_s23 = scalar_lea.vmem %s1346_s0, %s802_s13  ;;  %1013 = vmatprep.subr.bf16.mxu0 %v1012_v17 }
  0x10   : > { %v1197_v22 = vld [vmem:[%s1191_s23] sm:$0xff]  ;;  %v1200_v23 = vld [vmem:[%s1191_s23 + $0x8] sm:$0xff]  ;;  %v1207_v27 = vld [vmem:[%s1191_s23 + $0x10] sm:$0xff] }
  0x11   : > { %v208_v24 = vrot.slane %v1197_v22, 1  ;;  %v209_v25 = vrot.slane %v1200_v23, 1  ;;  %948 = vmatprep.mubr.msk.f32.mxu0 %vm223_vm0, %v1197_v22  ;;  %v1218_v32 = vld [vmem:[%s1191_s23 + $0x18] sm:$0xff]  ;;  %999 = vmatpush3.bf16.msra.mxu1 %v996_v16  ;;  %v211_v33 = vrot.slane %v1207_v27, 1  ;;  %v1222_v35 = vld [vmem:[%s1191_s23 + $0x20] sm:$0xff]  ;;  %v1232_v39 = vld [vmem:[%s1191_s23 + $0x28] sm:$0xff] }
  0x12   : > { %1015 = vmatpush3.bf16.msra.mxu0 %v1012_v17  ;;  %1001 = vmatprep.subr.bf16.mxu1 %v1000_v26  ;;  %v213_v36 = vrot.slane %v1218_v32, 1  ;;  %v215_v41 = vrot.slane %v1222_v35, 1  ;;  %v180_v42 = vld [vmem:[%s1191_s23 + $0x30] sm:$0xff]  ;;  %v217_v45 = vrot.slane %v1232_v39, 1  ;;  %v181_v48 = vld [vmem:[%s1191_s23 + $0x38] sm:$0xff]  ;;  %v476_v59 = vrot.slane %v1197_v22, 2  ;;  %s172_s23 = scalar_lea.vmem %s1349_s3, %s802_s13 }
  0x13   : > { %v210_v29 = vsel %vm207_vm1, %v208_v24, %v209_v25  ;;  %1017 = vmatprep.subr.bf16.mxu0 %v1016_v28  ;;  %v212_v40 = vsel %vm207_vm1, %v209_v25, %v211_v33  ;;  %v219_v50 = vrot.slane %v180_v42, 1  ;;  %v221_v53 = vrot.slane %v181_v48, 1 }
  0x14   : > { %920 = vmatprep.mubr.msk.f32.mxu1 %vm223_vm0, %v210_v29  ;;  %v214_v43 = vsel %vm207_vm1, %v211_v33, %v213_v36  ;;  %v216_v49 = vsel %vm207_vm1, %v213_v36, %v215_v41  ;;  %v218_v51 = vsel %vm207_vm1, %v215_v41, %v217_v45  ;;  %v477_v60 = vrot.slane %v1200_v23, 2 }
  0x15   : > { %1003 = vmatpush3.bf16.msra.mxu1 %v1000_v26  ;;  %v220_v56 = vsel %vm207_vm1, %v217_v45, %v219_v50  ;;  %v222_v57 = vsel %vm207_vm1, %v219_v50, %v221_v53  ;;  %v483_v61 = vrot.slane %v1222_v35, 2  ;;  %v485_v62 = vrot.slane %v1232_v39, 2  ;;  %v845_v26 = vld [vmem:[%s1348_s2] ss:$0 sm:$0xff] }
  0x16   : > { %1019 = vmatpush3.bf16.msra.mxu0 %v1016_v28  ;;  %1036 = vmatprep.subr.bf16.mxu1 %v1020_v34  ;;  %v487_v63 = vrot.slane %v180_v42, 2  ;;  %v479_v0 = vrot.slane %v1207_v27, 2  ;;  %v489_v1 = vrot.slane %v181_v48, 2  ;;  %v478_v2 = vsel %vm475_vm2, %v476_v59, %v477_v60 }
  0x17   : > { %1021 = vmatprep.subr.bf16.mxu0 %v1020_v34  ;;  %v481_v3 = vrot.slane %v1218_v32, 2  ;;  %v486_v4 = vsel %vm475_vm2, %v483_v61, %v485_v62 }
  0x18   : > { %921 = vmatmul.mubr.msk.f32.vlgmr.msra.gmra.mrb[0].mxu1 %vm223_vm0, %v212_v40  ;;  %v488_v5 = vsel %vm475_vm2, %v485_v62, %v487_v63  ;;  %v480_v6 = vsel %vm475_vm2, %v477_v60, %v479_v0  ;;  %v490_v7 = vsel %vm475_vm2, %v487_v63, %v489_v1 }
  0x19   : > { %949 = vmatmul.mubr.msk.f32.vlgmr.msra.gmra.mrb[0].mxu0 %vm223_vm0, %v1200_v23  ;;  %1040 = vmatpush3.bf16.msra.mxu1 %v1020_v34  ;;  %v482_v8 = vsel %vm475_vm2, %v479_v0, %v481_v3  ;;  %v484_v9 = vsel %vm475_vm2, %v481_v3, %v483_v61 }
  0x1a   : > { %1023 = vmatpush3.bf16.msra.mxu0 %v1020_v34  ;;  %923 = vmatprep.mubr.msk.f32.mxu1 %vm223_vm0, %v214_v43 }
  0x1b   : > { %951 = vmatprep.mubr.msk.f32.mxu0 %vm223_vm0, %v1207_v27  ;;  %1025 = vmatprep.subr.bf16.mxu0 %v1024_v44 }
  0x1c   : > { %924 = vmatmul.mubr.msk.f32.gmra.mrb[2].mxu1 %vm223_vm0, %v216_v49  ;;  %1037 = vmatprep.subr.bf16.mxu1 %v1024_v44 }
  0x1d   : > { %952 = vmatmul.mubr.msk.f32.gmra.mrb[2].mxu0 %vm223_vm0, %v1218_v32  ;;  %1041 = vmatpush3.bf16.msra.mxu1 %v1024_v44 }
  0x1e   : > { %1027 = vmatpush3.bf16.msra.mxu0 %v1024_v44  ;;  %926 = vmatprep.mubr.msk.f32.mxu1 %vm223_vm0, %v218_v51 }
  0x1f   : > { %954 = vmatprep.mubr.msk.f32.mxu0 %vm223_vm0, %v1222_v35  ;;  %1029 = vmatprep.subr.bf16.mxu0 %v1028_v52 }
  0x20   : > { %927 = vmatmul.mubr.msk.f32.gmra.mrb[4].mxu1 %vm223_vm0, %v220_v56  ;;  %1038 = vmatprep.subr.bf16.mxu1 %v1028_v52 }
  0x21   : > { %955 = vmatmul.mubr.msk.f32.gmra.mrb[4].mxu0 %vm223_vm0, %v1232_v39  ;;  %1042 = vmatpush3.bf16.msra.mxu1 %v1028_v52 }
  0x22   : > { %1031 = vmatpush3.bf16.msra.mxu0 %v1028_v52  ;;  %929 = vmatprep.mubr.msk.f32.mxu1 %vm223_vm0, %v222_v57 }
  0x23   : > { %957 = vmatprep.mubr.msk.f32.mxu0 %vm223_vm0, %v180_v42  ;;  %1033 = vmatprep.subr.bf16.mxu0 %v1032_v58 }
  0x24   : > { %930 = vmatmul.mubr.msk.f32.gmra.mrb[6].mxu1 %vm223_vm0, %v221_v53  ;;  %1039 = vmatprep.subr.bf16.mxu1 %v1032_v58 }
  0x25   : > { %958 = vmatmul.mubr.msk.f32.gmra.mrb[6].mxu0 %vm223_vm0, %v181_v48  ;;  %1043 = vmatpush3.bf16.msra.mxu1 %v1032_v58 }
  0x26   : > { %1035 = vmatpush3.bf16.msra.mxu0 %v1032_v58  ;;  %976 = vmatprep.mubr.msk.f32.mxu0 %vm223_vm0, %v478_v2 }
  0x27   : > { %982 = vmatprep.mubr.msk.f32.mxu1 %vm223_vm0, %v486_v4 }
  0x28   : > { %983 = vmatmul.mubr.msk.f32.vlgmr.msra.gmra.mrb[8].mxu1 %vm223_vm0, %v488_v5 }
  0x29   : > { %977 = vmatmul.mubr.msk.f32.vlgmr.msra.gmra.mrb[0].mxu0 %vm223_vm0, %v480_v6  ;;  %985 = vmatprep.mubr.msk.f32.mxu1 %vm223_vm0, %v490_v7 }
  0x2a   : > { %979 = vmatprep.mubr.msk.f32.mxu0 %vm223_vm0, %v482_v8 }
  0x2c   : > { %986 = vmatmul.mubr.msk.f32.gmra.mrb[10].mxu1 %vm223_vm0, %v489_v1 }
  0x2d   : > { %980 = vmatmul.mubr.msk.f32.gmra.mrb[2].mxu0 %vm223_vm0, %v484_v9 }
  0xeb   : > { %v922_v10 = vpop.f32.mrb[0].mxu1 }
  0xec   : > { %v306_v11 = vpop.f32.mrb[1].mxu1 }
  0xef   : > { %v925_v12 = vpop.f32.mrb[2].mxu1 }
  0xf0   : > { %v316_v13 = vpop.f32.mrb[3].mxu1 }
  0xf3   : > { %v928_v14 = vpop.f32.mrb[4].mxu1 }
  0xf4   : > { %v956_v15 = vpop.f32.mrb[4].mxu0  ;;  %v326_v16 = vpop.f32.mrb[5].mxu1 }
  0xf5   : > { %v453_v17 = vadd.f32 %v956_v15, %v928_v14  ;;  %v447_v18 = vpop.f32.mrb[5].mxu0 }
  0xf6   : > { %v448_v19 = vadd.f32 %v447_v18, %v326_v16 }
  0xf7   : > { %v931_v20 = vpop.f32.mrb[6].mxu1 }
  0xf8   : > { %v959_v21 = vpop.f32.mrb[6].mxu0  ;;  %v336_v22 = vpop.f32.mrb[7].mxu1 }
  0xf9   : > { %v463_v23 = vadd.f32 %v959_v21, %v931_v20  ;;  %v457_v24 = vpop.f32.mrb[7].mxu0 }
  0xfa   : > { %v458_v25 = vadd.f32 %v457_v24, %v336_v22 }
  0xfb   : > { %v984_v27 = vpop.f32.mrb[8].mxu1 }
  0xfc   : > { %v978_v28 = vpop.f32.mrb[0].mxu0  ;;  %v617_v29 = vadd.f32 %v984_v27, %v453_v17  ;;  %v593_v30 = vpop.f32.mrb[9].mxu1 }
  0xfd   : > { %v1044_v31 = vadd.f32 %v978_v28, %v922_v10  ;;  %v573_v32 = vpop.f32.mrb[1].mxu0  ;;  %v616_v33 = vadd.f32 %v593_v30, %v448_v19 }
  0xfe   : > { %v1299_v34 = vadd.f32 %v845_v26, %v617_v29  ;;  %v1045_v35 = vadd.f32 %v573_v32, %v306_v11 }
  0xff   : > { %v1301_v36 = vadd.f32 %v1044_v31, %v845_v26  ;;  %v1303_v37 = vadd.f32 %v845_v26, %v616_v33  ;;  %v987_v38 = vpop.f32.mrb[10].mxu1 }
 0x100   : > { %v851_v39 = vmul.f32 -1.442695, %v1299_v34  ;;  %v1306_v40 = vadd.f32 %v1045_v35, %v845_v26  ;;  %v981_v41 = vpop.f32.mrb[2].mxu0  ;;  %v619_v42 = vadd.f32 %v987_v38, %v463_v23  ;;  %v603_v43 = vpop.f32.mrb[11].mxu1 }
 0x101   : > { %v847_v44 = vmul.f32 -1.442695, %v1301_v36  ;;  %v850_v45 = vmul.f32 -1.442695, %v1303_v37  ;;  %v1046_v46 = vadd.f32 %v981_v41, %v925_v12  ;;  %v583_v47 = vpop.f32.mrb[3].mxu0  ;;  %v618_v48 = vadd.f32 %v603_v43, %v458_v25 }
 0x102   : > { %1069 = vpow2.f32 %v851_v39  ;;  %v846_v49 = vmul.f32 -1.442695, %v1306_v40  ;;  %v1311_v50 = vadd.f32 %v845_v26, %v619_v42  ;;  %v1047_v51 = vadd.f32 %v583_v47, %v316_v13 }
 0x103   : > { %1071 = vpow2.f32 %v847_v44  ;;  %v1313_v52 = vadd.f32 %v1046_v46, %v845_v26  ;;  %v1315_v53 = vadd.f32 %v845_v26, %v618_v48 }
 0x104   : > { %1073 = vpow2.f32 %v846_v49  ;;  %v1317_v54 = vadd.f32 %v1047_v51, %v845_v26  ;;  %v853_v56 = vmul.f32 -1.442695, %v1311_v50 }
 0x105   : > { %v849_v55 = vmul.f32 -1.442695, %v1313_v52  ;;  %1075 = vpow2.f32 %v850_v45  ;;  %v852_v58 = vmul.f32 -1.442695, %v1315_v53 }
 0x106   : > { %v848_v57 = vmul.f32 -1.442695, %v1317_v54 }
 0x107   : > { %1077 = vpow2.f32 %v849_v55 }
 0x108   : > { %1079 = vpow2.f32 %v848_v57 }
 0x109   : > { %1081 = vpow2.f32 %v853_v56 }
 0x10a   : > { %1083 = vpow2.f32 %v852_v58 }
 0x10c   : > { %v1070_v59 = vpop.eup %1069 }
 0x10d   : > { %v1072_v60 = vpop.eup %1071  ;;  %v664_v61 = vadd.f32 1.0, %v1070_v59 }
 0x10e   : > { %v1074_v62 = vpop.eup %1073  ;;  %v660_v63 = vadd.f32 1.0, %v1072_v60 }
 0x10f   : > { %1085 = vrcp.f32 %v664_v61  ;;  %v659_v0 = vadd.f32 1.0, %v1074_v62  ;;  %v1076_v1 = vpop.eup %1075 }
 0x110   : > { %1087 = vrcp.f32 %v660_v63  ;;  %v663_v5 = vadd.f32 1.0, %v1076_v1 }
 0x111   : > { %v1078_v2 = vpop.eup %1077  ;;  %1089 = vrcp.f32 %v659_v0 }
 0x112   : > { %v1080_v3 = vpop.eup %1079  ;;  %v662_v4 = vadd.f32 1.0, %v1078_v2 }
 0x113   : > { %v1082_v6 = vpop.eup %1081  ;;  %v661_v7 = vadd.f32 1.0, %v1080_v3 }
 0x114   : > { %1091 = vrcp.f32 %v662_v4  ;;  %v1084_v8 = vpop.eup %1083  ;;  %v666_v9 = vadd.f32 1.0, %v1082_v6 }
 0x115   : > { %1093 = vrcp.f32 %v663_v5  ;;  %v665_v10 = vadd.f32 1.0, %v1084_v8 }
 0x116   : > { %1095 = vrcp.f32 %v661_v7 }
 0x117   : > { %1097 = vrcp.f32 %v666_v9 }
 0x118   : > { %1099 = vrcp.f32 %v665_v10 }
 0x119   : > { %v1086_v11 = vpop.eup %1085 }
 0x11a   : > { %v1088_v12 = vpop.eup %1087  ;;  %701 = vrot.lane.b32.xlu1 %v1086_v11, %s1109_s19 }
 0x11b   : > { %693 = vrot.lane.b32.xlu0 %v1088_v12, %s1109_s19  ;;  %v1090_v13 = vpop.eup %1089 }
 0x11e   : > { %v1092_v14 = vpop.eup %1091 }
 0x11f   : > { %691 = vrot.lane.b32.xlu0 %v1090_v13, %s1109_s19  ;;  %697 = vrot.lane.b32.xlu1 %v1092_v14, %s1109_s19  ;;  %v1094_v15 = vpop.eup %1093 }
 0x120   : > { %v1096_v16 = vpop.eup %1095 }
 0x121   : > { %v1098_v17 = vpop.eup %1097 }
 0x122   : > { %v1100_v18 = vpop.eup %1099 }
 0x123   : > { %695 = vrot.lane.b32.xlu1 %v1096_v16, %s1109_s19  ;;  %699 = vrot.lane.b32.xlu0 %v1094_v15, %s1109_s19 }
 0x127   : > { %705 = vrot.lane.b32.xlu1 %v1098_v17, %s1109_s19  ;;  %703 = vrot.lane.b32.xlu0 %v1100_v18, %s1109_s19 }
 0x18c   : > { %v702_v19 = vpop.permute.xlu1 %701 }
 0x18d   : > { %v694_v20 = vpop.permute.xlu0 %693  ;;  %v720_v21 = vadd.f32 %v702_v19, %v1299_v34 }
 0x18e   : > { %v716_v22 = vadd.f32 %v694_v20, %v1301_v36 }
 0x18f   : > { %v728_v23 = vmax.f32 %v720_v21, 0.0 }
 0x190   : > { %v724_v24 = vmax.f32 %v716_v22, 0.0 }
 0x191   : > { %736 = vst.msk [vmem:[%s172_s23 + $0x28] sm:$0xff] %vm223_vm0, %v728_v23  ;;  %v692_v25 = vpop.permute.xlu0 %691  ;;  %v698_v26 = vpop.permute.xlu1 %697 }
 0x192   : > { %732 = vst.msk [vmem:[%s172_s23 + $0x8] sm:$0xff] %vm223_vm0, %v724_v24  ;;  %v715_v27 = vadd.f32 %v692_v25, %v1306_v40  ;;  %v718_v28 = vadd.f32 %v698_v26, %v1313_v52 }
 0x194   : > { %v723_v29 = vmax.f32 %v715_v27, 0.0  ;;  %v726_v30 = vmax.f32 %v718_v28, 0.0 }
 0x195   : > { %v696_v31 = vpop.permute.xlu1 %695  ;;  %v700_v32 = vpop.permute.xlu0 %699 }
 0x196   : > { %731 = vst.msk [vmem:[%s172_s23] sm:$0xff] %vm223_vm0, %v723_v29  ;;  %734 = vst.msk [vmem:[%s172_s23 + $0x18] sm:$0xff] %vm223_vm0, %v726_v30  ;;  %v717_v33 = vadd.f32 %v696_v31, %v1317_v54  ;;  %v719_v34 = vadd.f32 %v700_v32, %v1303_v37 }
 0x198   : > { %v725_v35 = vmax.f32 %v717_v33, 0.0  ;;  %v727_v36 = vmax.f32 %v719_v34, 0.0 }
 0x199   : > { %v706_v38 = vpop.permute.xlu1 %705  ;;  %v704_v39 = vpop.permute.xlu0 %703 }
 0x19a   : > { %733 = vst.msk [vmem:[%s172_s23 + $0x10] sm:$0xff] %vm223_vm0, %v725_v35  ;;  %735 = vst.msk [vmem:[%s172_s23 + $0x20] sm:$0xff] %vm223_vm0, %v727_v36  ;;  %v722_v40 = vadd.f32 %v706_v38, %v1311_v50  ;;  %v721_v41 = vadd.f32 %v704_v39, %v1315_v53 }
 0x19c   : > { %v730_v42 = vmax.f32 %v722_v40, 0.0  ;;  %v729_v43 = vmax.f32 %v721_v41, 0.0 }
 0x19e   : > { %739 = vst.msk [vmem:[%s172_s23 + $0x38] sm:$0x3f] %vm738_vm3, %v730_v42 }
 0x19f   : > { %737 = vst.msk [vmem:[%s172_s23 + $0x30] sm:$0xff] %vm223_vm0, %v729_v43 }
 0x1a0 PF: > { %s13_s12 = sadd.s32 1, %s1107_s12  }
 0x1a1   : > { %p10_p4 = scmp.ge.s32.totalorder %s13_s12, 4  }
 0x1a3   :  { %12 = sbr.rel (!%p10_p4) target bundleno = 1 (0x1), region = 64 }

</bundles_post_ra>
